<compile_context>
chip_gen: v5e
topology: v5e:2x2
jax: 0.10.0
libtpu: 0.0.40
codegen_flags: <defaults>
</compile_context>

<pallas_src>
import functools

import jax
import jax.numpy as jnp
from jax.experimental import pallas as pl
from jax.experimental.pallas import tpu as pltpu

_EPS = 1e-5


def _round_up(a, b):
    return (a + b - 1) // b * b


def _budgets():
    """Per-generation VMEM / streaming budgets (conservative fallback)."""
    try:
        cap = int(getattr(pltpu.get_tpu_info(), "vmem_capacity_bytes", 0))
    except Exception:  # defensive: unknown backend / API drift
        cap = 0
    if cap >= 100 * 1024 * 1024:          # v5e / v6e: 128 MiB VMEM per core
        return dict(vmem_limit=64 << 20, stream=48 << 20, pix_cap=16384,
                    fused=40 << 20)
    # v7x (64 MiB VMEM per TC) or unknown: stay conservative.
    return dict(vmem_limit=32 << 20, stream=16 << 20, pix_cap=8192,
                fused=20 << 20)


def _choose_tile(hw, bytes_per_col, stream_budget, pix_cap, force_tile=None):
    """Pick the pixel-axis tile THW (multiple of 128 or full width) + #tiles."""
    if force_tile is not None:                       # testing knob
        thw = force_tile if hw > force_tile else hw
        return thw, pl.cdiv(hw, thw)
    cap = max(128, min(pix_cap,
                       (stream_budget // max(bytes_per_col, 1)) // 128 * 128))
    if hw <= cap:
        return hw, 1                                 # one full-width tile
    # Prefer an exact 128-multiple divisor, but never one below ~cap/4 / 2048:
    # small tiles fall off the HBM-streaming efficiency cliff.
    min_ok = max(2048, cap // 4)
    for t in range(cap, min_ok - 1, -128):
        if hw % t == 0:
            return t, hw // t
    return cap, pl.cdiv(hw, cap)                     # ragged: last tile masked


# ---- streaming pass 1: per-(chunk, batch, channel) sum / sum-sq of W @ x ----
def _make_stats_kernel(hw, thw, tiles_per_chunk, n_chunks):
    covered = n_chunks * tiles_per_chunk * thw
    needs_mask = covered != hw            # ragged last tile / duplicated tile

    def kernel(x_ref, w_ref, csum_ref, csq_ref):
        c = pl.program_id(0)
        t = pl.program_id(2)

        @pl.when(t == 0)
        def _():
            csum_ref[...] = jnp.zeros_like(csum_ref)
            csq_ref[...] = jnp.zeros_like(csq_ref)

        y = jnp.dot(w_ref[...], x_ref[0], preferred_element_type=jnp.float32)
        if needs_mask:
            start = (c * tiles_per_chunk + t) * thw
            col = jax.lax.broadcasted_iota(jnp.int32, (1, thw), 1) + start
            y = jnp.where(col < hw, y, 0.0)
        csum_ref[...] += jnp.sum(y, axis=1, keepdims=True)[None, None]
        csq_ref[...] += jnp.sum(y * y, axis=1, keepdims=True)[None, None]

    return kernel


# ---- streaming pass 2: recompute W @ x, fused BN scale/shift + ReLU --------
def _conv_bn_relu_kernel(x_ref, w_ref, scale_ref, shift_ref, o_ref):
    y = jnp.dot(w_ref[...], x_ref[0], preferred_element_type=jnp.float32)
    o_ref[0] = jnp.maximum(y * scale_ref[...] + shift_ref[...],
                           0.0).astype(o_ref.dtype)


# ---- fused single-read path: x resident in VMEM, one kernel does it all ----
def _make_fused_kernel(n, hw):
    inv_count = 1.0 / float(n * hw)

    def kernel(x_ref, w_ref, gamma_ref, beta_ref, o_ref):
        w = w_ref[...]
        cout = w.shape[0]

        def stats_body(i, carry):
            csum, csq = carry
            y = jnp.dot(w, x_ref[i], preferred_element_type=jnp.float32)
            return (csum + jnp.sum(y, axis=1, keepdims=True),
                    csq + jnp.sum(y * y, axis=1, keepdims=True))

        zero = jnp.zeros((cout, 1), jnp.float32)
        csum, csq = jax.lax.fori_loop(0, n, stats_body, (zero, zero))
        mean = csum * inv_count
        var = csq * inv_count - mean * mean          # biased var (training BN)
        scale = gamma_ref[...] * jax.lax.rsqrt(var + _EPS)
        shift = beta_ref[...] - scale * mean

        def out_body(i, _):
            y = jnp.dot(w, x_ref[i], preferred_element_type=jnp.float32)
            o_ref[i] = jnp.maximum(y * scale + shift, 0.0).astype(o_ref.dtype)
            return 0

        jax.lax.fori_loop(0, n, out_body, 0)

    return kernel


@functools.partial(jax.jit, static_argnames=("_force_two_pass", "_force_tile"))
def conv1x1_forward(x_nchw, w, b, gamma, beta, *,
                    _force_two_pass=False, _force_tile=None):
    """x_nchw: (N, Cin, H, W); w: (Cout, Cin); b, gamma, beta: (Cout,)."""
    del b  # conv bias cancels exactly under training-mode BatchNorm.
    N, Cin, H, W = x_nchw.shape
    Cout = w.shape[0]
    HW = H * W
    budgets = _budgets()

    x_dtype = x_nchw.dtype
    out_dtype = x_dtype
    isz = jnp.dtype(x_dtype).itemsize
    osz = jnp.dtype(out_dtype).itemsize
    cin_p = _round_up(Cin, 8)
    cout_p = _round_up(Cout, 8)

    # NCHW -> (N, Cin, HW): pure reshape, no copy / transpose; keep dtype.
    x3 = x_nchw.reshape(N, Cin, HW)
    w2 = w.astype(x_dtype)                            # (Cout, Cin)
    gamma2 = gamma.reshape(Cout, 1).astype(jnp.float32)
    beta2 = beta.reshape(Cout, 1).astype(jnp.float32)

    # ---- fused fast path: whole problem resident in VMEM (x read once) ----
    x_bytes = N * cin_p * HW * isz
    out_bytes = N * cout_p * HW * osz
    y_tmp_bytes = 4 * cout_p * HW * 4                 # a few f32 (Cout,HW) temps
    fused_bytes = 2 * (x_bytes + out_bytes) + y_tmp_bytes
    if (not _force_two_pass) and fused_bytes <= budgets["fused"]:
        out3 = pl.pallas_call(
            _make_fused_kernel(N, HW),
            out_shape=jax.ShapeDtypeStruct((N, Cout, HW), out_dtype),
            grid_spec=pltpu.PrefetchScalarGridSpec(
                num_scalar_prefetch=0,
                grid=(1,),
                in_specs=[
                    pl.BlockSpec((N, Cin, HW), lambda i: (0, 0, 0)),
                    pl.BlockSpec((Cout, Cin), lambda i: (0, 0)),
                    pl.BlockSpec((Cout, 1), lambda i: (0, 0)),
                    pl.BlockSpec((Cout, 1), lambda i: (0, 0)),
                ],
                out_specs=pl.BlockSpec((N, Cout, HW), lambda i: (0, 0, 0)),
            ),
            compiler_params=pltpu.CompilerParams(
                dimension_semantics=("arbitrary",),
                vmem_limit_bytes=budgets["vmem_limit"]),
        )(x3, w2, gamma2, beta2)
        return out3.reshape(N, Cout, H, W)

    # ---- streaming pass 1: batch statistics of the conv output ----
    # Pass-1 only streams x, so its per-column byte budget is x-only.
    thw_s, num_t_s = _choose_tile(HW, 2 * isz * cin_p, budgets["stream"],
                                  budgets["pix_cap"], _force_tile)
    # Split the pixel-tile range into two "parallel" chunks when batch == 1 so
    # both v7x TensorCores get work; single-TC chips are unaffected.
    n_chunks = 2 if (N == 1 and num_t_s >= 2) else 1
    tiles_per_chunk = pl.cdiv(num_t_s, n_chunks)

    if n_chunks * tiles_per_chunk == num_t_s:
        def x_stats_map(c, n, t):
            return (n, 0, c * tiles_per_chunk + t)
    else:
        # Odd tile count: clamp the duplicated tile's index; its contribution
        # is zeroed by the lane mask inside the kernel.
        def x_stats_map(c, n, t):
            return (n, 0, jnp.minimum(c * tiles_per_chunk + t, num_t_s - 1))

    csum, csq = pl.pallas_call(
        _make_stats_kernel(HW, thw_s, tiles_per_chunk, n_chunks),
        out_shape=(
            jax.ShapeDtypeStruct((n_chunks, N, Cout, 1), jnp.float32),
            jax.ShapeDtypeStruct((n_chunks, N, Cout, 1), jnp.float32),
        ),
        grid_spec=pltpu.PrefetchScalarGridSpec(
            num_scalar_prefetch=0,
            grid=(n_chunks, N, tiles_per_chunk),
            in_specs=[
                pl.BlockSpec((1, Cin, thw_s), x_stats_map),
                pl.BlockSpec((Cout, Cin), lambda c, n, t: (0, 0)),
            ],
            out_specs=[
                pl.BlockSpec((1, 1, Cout, 1), lambda c, n, t: (c, n, 0, 0)),
                pl.BlockSpec((1, 1, Cout, 1), lambda c, n, t: (c, n, 0, 0)),
            ],
        ),
        compiler_params=pltpu.CompilerParams(
            dimension_semantics=("parallel", "parallel", "arbitrary"),
            vmem_limit_bytes=budgets["vmem_limit"]),
    )(x3, w2)

    # tiny per-channel glue: fold batch stats + affine into scale/shift
    count = jnp.float32(N * HW)                       # valid pixels only
    s = jnp.sum(csum, axis=(0, 1))                    # (Cout, 1)
    sq = jnp.sum(csq, axis=(0, 1))
    mean = s / count
    var = sq / count - mean * mean                    # biased var (training BN)
    scale = gamma2 * jax.lax.rsqrt(var + _EPS)
    shift = beta2 - scale * mean

    # ---- streaming pass 2: fused conv + BN + ReLU, lane-dense output ----
    thw2, num_t2 = _choose_tile(HW, 2 * (isz * cin_p + osz * cout_p),
                                budgets["stream"], budgets["pix_cap"],
                                _force_tile)
    out3 = pl.pallas_call(
        _conv_bn_relu_kernel,
        out_shape=jax.ShapeDtypeStruct((N, Cout, HW), out_dtype),
        grid_spec=pltpu.PrefetchScalarGridSpec(
            num_scalar_prefetch=0,
            grid=(N, num_t2),
            in_specs=[
                pl.BlockSpec((1, Cin, thw2), lambda n, t: (n, 0, t)),
                pl.BlockSpec((Cout, Cin), lambda n, t: (0, 0)),
                pl.BlockSpec((Cout, 1), lambda n, t: (0, 0)),
                pl.BlockSpec((Cout, 1), lambda n, t: (0, 0)),
            ],
            out_specs=pl.BlockSpec((1, Cout, thw2), lambda n, t: (n, 0, t)),
        ),
        compiler_params=pltpu.CompilerParams(
            dimension_semantics=("parallel", "parallel"),
            vmem_limit_bytes=budgets["vmem_limit"]),
    )(x3, w2, scale, shift)

    return out3.reshape(N, Cout, H, W)


def _reference(x_nchw, w, b, gamma, beta):
    # pure-JAX reference (Conv 1x1 + training-mode BN + ReLU)
    y = jnp.einsum("nchw,oc->nohw", x_nchw, w) + b[None, :, None, None]
    mean = jnp.mean(y, axis=(0, 2, 3), keepdims=True)
    var = jnp.mean((y - mean) ** 2, axis=(0, 2, 3), keepdims=True)
    yhat = (y - mean) * jax.lax.rsqrt(var + _EPS)
    out = gamma[None, :, None, None] * yhat + beta[None, :, None, None]
    return jnp.maximum(out, 0.0)


if __name__ == "__main__":
    def make_case(key, n, cin, cout, h, w_):
        kx, kw, kb = jax.random.split(key, 3)
        x = jax.random.normal(kx, (n, cin, h, w_), dtype=jnp.float32)
        bound = 1.0 / (cin ** 0.5)
        conv_w = jax.random.uniform(kw, (cout, cin), jnp.float32, -bound, bound)
        conv_b = jax.random.uniform(kb, (cout,), jnp.float32, -bound, bound)
        gamma = jnp.ones((cout,), jnp.float32)
        beta = jnp.zeros((cout,), jnp.float32)
        return x, conv_w, conv_b, gamma, beta

    # Main case (fused single-read path): N=2, Cin=4, Cout=8, 16x16.
    x, conv_w, conv_b, gamma, beta = make_case(jax.random.PRNGKey(0),
                                               2, 4, 8, 16, 16)
    out = conv1x1_forward(x, conv_w, conv_b, gamma, beta)
    out = jax.block_until_ready(out)
    ref = _reference(x, conv_w, conv_b, gamma, beta)
    assert out.shape == (2, 8, 16, 16)
    assert jnp.max(jnp.abs(out - ref)) < 1e-4, "fused path mismatch vs reference"

    # Streaming two-pass path with ragged H*W and forced small tiles:
    # exercises the lane masking, N==1 pixel-chunk split, and boundary blocks.
    x2, w2_, b2_, g2_, be2_ = make_case(jax.random.PRNGKey(1), 1, 4, 8, 16, 20)
    out2 = conv1x1_forward(x2, w2_, b2_, g2_, be2_,
                           _force_two_pass=True, _force_tile=128)
    out2 = jax.block_until_ready(out2)
    ref2 = _reference(x2, w2_, b2_, g2_, be2_)
    assert jnp.max(jnp.abs(out2 - ref2)) < 1e-4, "streaming path mismatch vs reference"

    print("KERNEL_OK")
</pallas_src>

<mosaic_0001>
module attributes {stable_mosaic.version = 11 : i64} {
  func.func @kernel(%arg0: i32, %arg1: memref<2x4x256xf32, #tpu.memory_space<vmem>>, %arg2: memref<8x4xf32, #tpu.memory_space<vmem>>, %arg3: memref<8x1xf32, #tpu.memory_space<vmem>>, %arg4: memref<8x1xf32, #tpu.memory_space<vmem>>, %arg5: memref<2x8x256xf32, #tpu.memory_space<vmem>>) attributes {dimension_semantics = [#tpu.dimension_semantics<arbitrary>], iteration_bounds = array<i64: 1>, scalar_prefetch = 0 : i64, scratch_operands = 0 : i64, tpu.core_type = #tpu.core_type<tc>, window_params = [{pipeline_mode = #tpu.pipeline_mode<synchronous>, transform_indices = @transform_0, window_bounds = array<i64: 2, 4, 256>}, {pipeline_mode = #tpu.pipeline_mode<synchronous>, transform_indices = @transform_1, window_bounds = array<i64: 8, 4>}, {pipeline_mode = #tpu.pipeline_mode<synchronous>, transform_indices = @transform_2, window_bounds = array<i64: 8, 1>}, {pipeline_mode = #tpu.pipeline_mode<synchronous>, transform_indices = @transform_3, window_bounds = array<i64: 8, 1>}, {pipeline_mode = #tpu.pipeline_mode<synchronous>, transform_indices = @transform_4, window_bounds = array<i64: 2, 8, 256>}]} {
    %c0 = arith.constant 0 : index
    %c0_0 = arith.constant 0 : index
    %0 = vector.load %arg2[%c0, %c0_0] : memref<8x4xf32, #tpu.memory_space<vmem>>, vector<8x4xf32>
    %cst = arith.constant 0.000000e+00 : f32
    %1 = vector.broadcast %cst : f32 to vector<8x1xf32>
    %c0_i32 = arith.constant 0 : i32
    %c2_i32 = arith.constant 2 : i32
    %2 = arith.addi %c0_i32, %c2_i32 : i32
    %c1_i32 = arith.constant 1 : i32
    %3:2 = scf.for %arg6 = %c0_i32 to %2 step %c1_i32 iter_args(%arg7 = %1, %arg8 = %1) -> (vector<8x1xf32>, vector<8x1xf32>)  : i32 {
      %19 = arith.index_cast %arg6 : i32 to index
      %c0_13 = arith.constant 0 : index
      %c0_14 = arith.constant 0 : index
      %20 = vector.load %arg1[%19, %c0_13, %c0_14] : memref<2x4x256xf32, #tpu.memory_space<vmem>>, vector<1x4x256xf32>
      %21 = vector.shape_cast %20 : vector<1x4x256xf32> to vector<4x256xf32>
      %cst_15 = arith.constant dense<0.000000e+00> : vector<8x256xf32>
      %22 = tpu.matmul %0, %21, %cst_15 {dimension_numbers = #tpu.dot_dimension_numbers<[1], [0], [0], [1], [0, 0, 1, 1], [], []>} : vector<8x4xf32>, vector<4x256xf32>, vector<8x256xf32> -> vector<8x256xf32>
      %cst_16 = arith.constant dense<0.000000e+00> : vector<8xf32>
      %23 = vector.multi_reduction <add>, %22, %cst_16 [1] : vector<8x256xf32> to vector<8xf32>
      %24 = vector.shape_cast %23 : vector<8xf32> to vector<8x1xf32>
      %25 = arith.addf %arg7, %24 : vector<8x1xf32>
      %26 = arith.mulf %22, %22 : vector<8x256xf32>
      %cst_17 = arith.constant dense<0.000000e+00> : vector<8xf32>
      %27 = vector.multi_reduction <add>, %26, %cst_17 [1] : vector<8x256xf32> to vector<8xf32>
      %28 = vector.shape_cast %27 : vector<8xf32> to vector<8x1xf32>
      %29 = arith.addf %arg8, %28 : vector<8x1xf32>
      scf.yield %25, %29 : vector<8x1xf32>, vector<8x1xf32>
    }
    %c2_i32_1 = arith.constant 2 : i32
    %cst_2 = arith.constant 0.001953125 : f32
    %4 = vector.broadcast %cst_2 : f32 to vector<8x1xf32>
    %5 = arith.mulf %3#0, %4 : vector<8x1xf32>
    %cst_3 = arith.constant 0.001953125 : f32
    %6 = vector.broadcast %cst_3 : f32 to vector<8x1xf32>
    %7 = arith.mulf %3#1, %6 : vector<8x1xf32>
    %8 = arith.mulf %5, %5 : vector<8x1xf32>
    %9 = arith.subf %7, %8 : vector<8x1xf32>
    %c0_4 = arith.constant 0 : index
    %c0_5 = arith.constant 0 : index
    %10 = vector.load %arg3[%c0_4, %c0_5] : memref<8x1xf32, #tpu.memory_space<vmem>>, vector<8x1xf32>
    %cst_6 = arith.constant 9.99999974E-6 : f32
    %11 = vector.broadcast %cst_6 : f32 to vector<8x1xf32>
    %12 = arith.addf %9, %11 : vector<8x1xf32>
    %13 = math.rsqrt %12 : vector<8x1xf32>
    %14 = arith.mulf %10, %13 : vector<8x1xf32>
    %c0_7 = arith.constant 0 : index
    %c0_8 = arith.constant 0 : index
    %15 = vector.load %arg4[%c0_7, %c0_8] : memref<8x1xf32, #tpu.memory_space<vmem>>, vector<8x1xf32>
    %16 = arith.mulf %14, %5 : vector<8x1xf32>
    %17 = arith.subf %15, %16 : vector<8x1xf32>
    %c0_i32_9 = arith.constant 0 : i32
    %c2_i32_10 = arith.constant 2 : i32
    %18 = arith.addi %c0_i32_9, %c2_i32_10 : i32
    %c1_i32_11 = arith.constant 1 : i32
    scf.for %arg6 = %c0_i32_9 to %18 step %c1_i32_11  : i32 {
      %19 = arith.index_cast %arg6 : i32 to index
      %c0_13 = arith.constant 0 : index
      %c0_14 = arith.constant 0 : index
      %20 = vector.load %arg1[%19, %c0_13, %c0_14] : memref<2x4x256xf32, #tpu.memory_space<vmem>>, vector<1x4x256xf32>
      %21 = vector.shape_cast %20 : vector<1x4x256xf32> to vector<4x256xf32>
      %cst_15 = arith.constant dense<0.000000e+00> : vector<8x256xf32>
      %22 = tpu.matmul %0, %21, %cst_15 {dimension_numbers = #tpu.dot_dimension_numbers<[1], [0], [0], [1], [0, 0, 1, 1], [], []>} : vector<8x4xf32>, vector<4x256xf32>, vector<8x256xf32> -> vector<8x256xf32>
      %23 = vector.broadcast %14 : vector<8x1xf32> to vector<8x256xf32>
      %24 = arith.mulf %22, %23 : vector<8x256xf32>
      %25 = vector.broadcast %17 : vector<8x1xf32> to vector<8x256xf32>
      %26 = arith.addf %24, %25 : vector<8x256xf32>
      %cst_16 = arith.constant 0.000000e+00 : f32
      %27 = vector.broadcast %cst_16 : f32 to vector<8x256xf32>
      %28 = arith.maximumf %26, %27 : vector<8x256xf32>
      %29 = arith.index_cast %arg6 : i32 to index
      %c0_17 = arith.constant 0 : index
      %c0_18 = arith.constant 0 : index
      %30 = vector.load %arg5[%29, %c0_17, %c0_18] : memref<2x8x256xf32, #tpu.memory_space<vmem>>, vector<1x8x256xf32>
      %31 = vector.shape_cast %30 : vector<1x8x256xf32> to vector<8x256xf32>
      %32 = vector.shape_cast %28 : vector<8x256xf32> to vector<1x8x256xf32>
      tpu.vector_store %arg5[%29, %c0_17, %c0_18], %32 {strides = array<i32>} : memref<2x8x256xf32, #tpu.memory_space<vmem>>, vector<1x8x256xf32>,
    }
    %c2_i32_12 = arith.constant 2 : i32
    return
  }
  func.func @transform_0(%arg0: i32) -> (i32, i32, i32) {
    %c0_i32 = arith.constant 0 : i32
    %c0_i32_0 = arith.constant 0 : i32
    %c0_i32_1 = arith.constant 0 : i32
    %c0_i32_2 = arith.constant 0 : i32
    return %c0_i32, %c0_i32_0, %c0_i32_1 : i32, i32, i32
  }
  func.func @transform_1(%arg0: i32) -> (i32, i32) {
    %c0_i32 = arith.constant 0 : i32
    %c0_i32_0 = arith.constant 0 : i32
    %c0_i32_1 = arith.constant 0 : i32
    return %c0_i32, %c0_i32_0 : i32, i32
  }
  func.func @transform_2(%arg0: i32) -> (i32, i32) {
    %c0_i32 = arith.constant 0 : i32
    %c0_i32_0 = arith.constant 0 : i32
    %c0_i32_1 = arith.constant 0 : i32
    return %c0_i32, %c0_i32_0 : i32, i32
  }
  func.func @transform_3(%arg0: i32) -> (i32, i32) {
    %c0_i32 = arith.constant 0 : i32
    %c0_i32_0 = arith.constant 0 : i32
    %c0_i32_1 = arith.constant 0 : i32
    return %c0_i32, %c0_i32_0 : i32, i32
  }
  func.func @transform_4(%arg0: i32) -> (i32, i32, i32) {
    %c0_i32 = arith.constant 0 : i32
    %c0_i32_0 = arith.constant 0 : i32
    %c0_i32_1 = arith.constant 0 : i32
    %c0_i32_2 = arith.constant 0 : i32
    return %c0_i32, %c0_i32_0, %c0_i32_1 : i32, i32, i32
  }
}

</mosaic_0001>

<bundles_post_ra>
// kernel: conv1x1_forward.1
= control target key start
LH: loop header
LB: loop body
LE: loop exit
PB: predicated region body
PF: predicated region fallthrough
CT: control target
= control target key end

     0   :  { %v290_v1 = vmov 0.0   ;;  %v294_v2 = vmov 0.0   ;;  %s337_s17 = smov 0   ;;  %s383_s0 = inlined_call_operand.vmem [shape: f32[2,4,256], index: 0, kind: input, shape index: {}]   ;;  %s384_s1 = inlined_call_operand.vmem [shape: f32[8,4], index: 1, kind: input, shape index: {}]   ;;  %s385_s2 = inlined_call_operand.vmem [shape: f32[8,1], index: 2, kind: input, shape index: {}]   ;;  %s386_s3 = inlined_call_operand.vmem [shape: f32[8,1], index: 3, kind: input, shape index: {}]   ;;  %s387_s4 = inlined_call_operand.vmem [shape: f32[2,8,256], index: 4, kind: output, shape index: {}]  }
   0x1   :  { %v335_v0 = vld [vmem:[%s384_s1] sm:$0xff] }
   0x2 LB: > { %s235_s18 = sshll.u32 %s300_s17, 3  ;;  %vm38_vm0 = vcmask 1043456   ;;  %vm34_vm1 = vcmask 31744   ;;  %s23_s17 = sadd.s32 1, %s300_s17   ;;  %s300_s17 = sphi %s337_s17, %s23_s17   ;;  %v296_v2 = vphi %v294_v2, %v295_v2   ;;  %v292_v1 = vphi %v290_v1, %v291_v1  }
   0x3   : > { %s28_s21 = scalar_lea.vmem %s383_s0, %s235_s18  ;;  %p20_p0 = scmp.ge.s32.totalorder %s23_s17, 2  }
   0x4   : > { %v29_v3 = vld [vmem:[%s28_s21] sm:$0xff]  ;;  %s361_s25 = smov (%p20_p0), 0  }
   0x5   : > { %31 = vst [vmem:[#allocation1] ss:$2 sm:$0xff] %v29_v3  ;;  %v97_v26 = vld [vmem:[%s385_s2] sm:$0xff] (%p20_p0) }
   0x6   :  { %v110_v30 = vld [vmem:[%s386_s3] sm:$0xff] (%p20_p0) }
   0xc   : > { %v32_v4 = vld.sshfl [vmem:[#allocation1] sm:$0xff pattern:$0x75316420]  ;;  %v33_v5 = vld.sshfl [vmem:[#allocation1 + $0x8] sm:$0xff pattern:$0x75316420] }
   0xd   : > { %224 = vmatpush.msk.msra.mxu0 %vm38_vm0, %v32_v4  ;;  %226 = vmatpush.msk.msra.mxu1 %vm38_vm0, %v33_v5 }
   0xe   : > { %225 = vmatmul.msk.f32.vlgmr.msra.gmra.mxu0 %vm34_vm1, %v335_v0  ;;  %227 = vmatmul.msk.f32.vlgmr.msra.gmra.mxu1 %vm34_vm1, %v335_v0 }
  0x8b   : > { %v60_v6 = vpop.f32.mrf.mxu0  ;;  %v80_v7 = vpop.f32.mrf.mxu1 }
  0x8c   : > { %v83_v8 = vadd.f32 %v80_v7, %v60_v6  ;;  %v87_v9 = vmul.f32 %v60_v6, %v60_v6  ;;  %v88_v10 = vmul.f32 %v80_v7, %v80_v7 }
  0x8e   : > { %84 = vadd.xlane.f32.xlu0 %v83_v8  ;;  %v89_v11 = vadd.f32 %v88_v10, %v87_v9 }
  0x96   : > { %90 = vadd.xlane.f32.xlu0 %v89_v11 }
 0x101   : > { %v85_v12 = vpop.xlane.xlu0 %84 }
 0x102   : > { %v86_v13 = vadd.f32 %v296_v2, %v85_v12  }
 0x104   : > { %v295_v2 = vmov %v86_v13   ;;  %v93_v16 = vmul.f32 (%p20_p0), 0.001953125, %v86_v13 }
 0x106   :  { %v95_v18 = vmul.f32 (%p20_p0), %v93_v16, %v93_v16 }
 0x108   :  { %22 = sbr.rel (!%p20_p0) target bundleno = 2 (0x2), region = 53 }
 0x109   : > { %v91_v14 = vpop.xlane.xlu0 %90 }
 0x10a   : > { %v92_v15 = vadd.f32 %v292_v1, %v91_v14  }
 0x10c   : > { %v291_v1 = vmov %v92_v15   ;;  %v94_v17 = vmul.f32 (%p20_p0), 0.001953125, %v92_v15 }
 0x10e   :  { %v96_v19 = vsub.f32 %v94_v17, %v95_v18 }
 0x110   :  { %v98_v20 = vadd.f32 1e-05, %v96_v19 }
 0x112   :  { %271 = vrsqrt.f32 %v98_v20  ;;  %vm105_vm2 = vweird.f32 %v98_v20 }
 0x118   :  { %v272_v21 = vpop.eup %271 }
 0x119   :  { %v100_v22 = vmul.f32 %v272_v21, %v98_v20  ;;  %vm106_vm3 = vweird.f32 %v272_v21 }
 0x11a   :  { %vm107_vm4 = vmor %vm105_vm2, %vm106_vm3 }
 0x11b   :  { %v101_v23 = vmul.f32 %v272_v21, %v100_v22 }
 0x11d   :  { %v102_v24 = vmul.f32 0.5, %v101_v23 }
 0x11f   :  { %v103_v25 = vsub.f32 1.5, %v102_v24 }
 0x121   :  { %v104_v27 = vmul.f32 %v272_v21, %v103_v25 }
 0x123   :  { %v108_v28 = vsel %vm107_vm4, %v272_v21, %v104_v27 }
 0x124   :  { %v109_v29 = vmul.f32 %v108_v28, %v97_v26 }
 0x126   :  { %v111_v31 = vmul.f32 %v109_v29, %v93_v16 }
 0x128   :  { %v112_v32 = vsub.f32 %v110_v30, %v111_v31 }
 0x129 LB: > { %v306_v33 = vmov 0   ;;  %s236_s2 = sshll.u32 %s304_s25, 3  ;;  %s237_s3 = sshll.u32 %s304_s25, 4  ;;  %s304_s25 = sphi %s361_s25, %s118_s25  }
 0x12a   : > { %273 = vset.pattern.permute.xlu0 %v306_v33  ;;  %s121_s28 = scalar_lea.vmem %s383_s0, %s236_s2  ;;  %s193_s5 = scalar_lea.vmem %s387_s4, %s237_s3 }
 0x12b   : > { %178 = vperm.xlu0 %273, %v109_v29   ;;  %v122_v34 = vld [vmem:[%s121_s28] sm:$0xff]  ;;  %s118_s25 = sadd.s32 1, %s304_s25  }
 0x12c   : > { %124 = vst [vmem:[#allocation1] ss:$2 sm:$0xff] %v122_v34  ;;  %p115_p1 = scmp.ge.s32.totalorder %s118_s25, 2  }
 0x133   : > { %185 = vperm.xlu0 %273, %v112_v32   ;;  %v125_v35 = vld.sshfl [vmem:[#allocation1] sm:$0xff pattern:$0x75316420]  ;;  %v126_v36 = vld.sshfl [vmem:[#allocation1 + $0x8] sm:$0xff pattern:$0x75316420] }
 0x134   : > { %230 = vmatpush.msk.msra.mxu0 %vm38_vm0, %v125_v35  ;;  %232 = vmatpush.msk.msra.mxu1 %vm38_vm0, %v126_v36 }
 0x135   : > { %231 = vmatmul.msk.f32.vlgmr.msra.gmra.mxu0 %vm34_vm1, %v335_v0  ;;  %233 = vmatmul.msk.f32.vlgmr.msra.gmra.mxu1 %vm34_vm1, %v335_v0 }
 0x19d   : > { %v179_v37 = vpop.permute.xlu0 %178 }
 0x1a5   : > { %v186_v42 = vpop.permute.xlu0 %185 }
 0x1b2   : > { %v153_v38 = vpop.f32.mrf.mxu0  ;;  %v173_v39 = vpop.f32.mrf.mxu1 }
 0x1b3   : > { %v181_v40 = vmul.f32 %v179_v37, %v153_v38  ;;  %v182_v41 = vmul.f32 %v179_v37, %v173_v39 }
 0x1b5   : > { %v188_v43 = vadd.f32 %v186_v42, %v181_v40  ;;  %v189_v44 = vadd.f32 %v186_v42, %v182_v41 }
 0x1b6   :  { %117 = sbr.rel (!%p115_p1) target bundleno = 297 (0x129), region = 64 }
 0x1b7   : > { %v190_v45 = vmax.f32 %v188_v43, 0.0  ;;  %v191_v46 = vmax.f32 %v189_v44, 0.0 }
 0x1b9   : > { %194 = vst [vmem:[%s193_s5] sm:$0xff] %v190_v45 }
 0x1ba   : > { %195 = vst [vmem:[%s193_s5 + $0x8] sm:$0xff] %v191_v46 }

</bundles_post_ra>
